<compile_context>
chip_gen: v6e
topology: v6e:2x2x1
jax: 0.10.0
libtpu: 0.0.40
codegen_flags: <defaults>
</compile_context>

<pallas_src>
import functools

import jax
import jax.numpy as jnp
from jax.experimental import pallas as pl
from jax.experimental.pallas import tpu as pltpu


def _ce_rows(x, labels_col):
    """Per-row cross-entropy: logsumexp(x) - x[label].  Returns (TB, 1) f32."""
    x = x.astype(jnp.float32)                      # upcast in-kernel (hidden under DMA)
    tb, c = x.shape
    class_ids = jax.lax.broadcasted_iota(jnp.int32, (tb, c), 1)
    m = jnp.max(x, axis=-1, keepdims=True)                                   # (TB, 1)
    lse = m + jnp.log(jnp.sum(jnp.exp(x - m), axis=-1, keepdims=True))       # (TB, 1)
    picked = jnp.sum(jnp.where(class_ids == labels_col, x, 0.0),
                     axis=-1, keepdims=True)                                 # (TB, 1)
    return lse - picked


def _loss_combine_kernel(x1_ref, x2_ref, x3_ref, lab_ref, out_ref,
                         *, batch, tile_rows, masked_tail):
    """One grid step == one batch tile; all three heads processed here.

    x{1,2,3}_ref : (TB, C_h) logits for head h (native dtype)
    lab_ref      : (TB, 3)   int32 labels
    out_ref      : (1, 8, 128) f32 per-tile partial sum (broadcast-filled)
    """
    labels = lab_ref[...]                          # (TB, 3) int32

    r1 = _ce_rows(x1_ref[...], labels[:, 0:1])     # (TB, 1)
    r2 = _ce_rows(x2_ref[...], labels[:, 1:2])
    r3 = _ce_rows(x3_ref[...], labels[:, 2:3])

    total = 2.0 * r1 + r2 + r3                     # weighted per-row loss (TB, 1)

    if masked_tail:                                # ragged final tile -> mask rows >= B
        row_ids = (jax.lax.broadcasted_iota(jnp.int32, (tile_rows, 1), 0)
                   + pl.program_id(0) * tile_rows)
        total = jnp.where(row_ids < batch, total, 0.0)

    partial = jnp.sum(total, axis=0, keepdims=True)            # (1, 1)
    out_ref[...] = jnp.broadcast_to(partial[None], (1, 8, 128))


def loss_combine(inputs, target, *, tile_rows=None):
    """inputs = (x1, x2, x3) logits (any float dtype); target = (B, 3) int labels."""
    x1, x2, x3 = inputs
    B = x1.shape[0]
    c1, c2, c3 = x1.shape[1], x2.shape[1], x3.shape[1]

    if tile_rows is None:
        # batch tile: multiple of 8, capped so double-buffered blocks stay small
        # (safe for v7x's 64 MiB VMEM even with a few thousand classes per head).
        tile_rows = min(-(-B // 8) * 8, 512)
    if tile_rows != B and tile_rows % 8 != 0:      # (8, 128) block-shape rule
        tile_rows = -(-tile_rows // 8) * 8

    num_tiles = pl.cdiv(B, tile_rows)
    labels = target.astype(jnp.int32)              # (B, 3); logits stay native dtype

    kernel = functools.partial(
        _loss_combine_kernel,
        batch=B,
        tile_rows=tile_rows,
        masked_tail=(num_tiles * tile_rows != B),
    )

    partials = pl.pallas_call(
        kernel,
        out_shape=jax.ShapeDtypeStruct((num_tiles, 8, 128), jnp.float32),
        grid_spec=pltpu.PrefetchScalarGridSpec(
            num_scalar_prefetch=0,
            grid=(num_tiles,),
            in_specs=[
                pl.BlockSpec((tile_rows, c1), lambda i: (i, 0)),
                pl.BlockSpec((tile_rows, c2), lambda i: (i, 0)),
                pl.BlockSpec((tile_rows, c3), lambda i: (i, 0)),
                pl.BlockSpec((tile_rows, 3), lambda i: (i, 0)),
            ],
            out_specs=pl.BlockSpec((1, 8, 128), lambda i: (i, 0, 0)),
        ),
        compiler_params=pltpu.CompilerParams(
            dimension_semantics=("parallel",),     # disjoint output blocks per tile
            vmem_limit_bytes=32 * 1024 * 1024,
        ),
    )(x1, x2, x3, labels)

    # final reduction + mean over batch in plain JAX (tiny).
    return jnp.sum(partials[:, 0, 0]) / B


def _reference(inputs, target):
    """Pure-JAX reference matching F.cross_entropy (mean reduction)."""
    def ce(logits, labels):
        logp = jax.nn.log_softmax(logits.astype(jnp.float32), axis=-1)
        picked = jnp.take_along_axis(logp, labels[:, None].astype(jnp.int32), axis=-1)
        return -jnp.mean(picked)

    x1, x2, x3 = inputs
    y = target.astype(jnp.int32)
    return 2.0 * ce(x1, y[:, 0]) + ce(x2, y[:, 1]) + ce(x3, y[:, 2])


if __name__ == "__main__":
    key = jax.random.PRNGKey(0)
    k1, k2, k3, k4 = jax.random.split(key, 4)

    B = 8
    C1, C2, C3 = 32, 16, 8  # three heads with different numbers of classes

    x1 = jax.random.normal(k1, (B, C1), dtype=jnp.float32)
    x2 = jax.random.normal(k2, (B, C2), dtype=jnp.float32)
    x3 = jax.random.normal(k3, (B, C3), dtype=jnp.float32)

    y1 = jax.random.randint(k4, (B,), 0, C1, dtype=jnp.int32)
    y2 = jax.random.randint(jax.random.fold_in(k4, 1), (B,), 0, C2, dtype=jnp.int32)
    y3 = jax.random.randint(jax.random.fold_in(k4, 2), (B,), 0, C3, dtype=jnp.int32)
    target = jnp.stack([y1, y2, y3], axis=1)  # (B, 3)

    loss = loss_combine((x1, x2, x3), target)
    loss = jax.block_until_ready(loss)

    ref = jax.block_until_ready(_reference((x1, x2, x3), target))
    assert abs(float(loss) - float(ref)) < 1e-4, (float(loss), float(ref))

    print("KERNEL_OK")
</pallas_src>

<mosaic_0001>
module attributes {stable_mosaic.version = 11 : i64} {
  func.func @_loss_combine_kernel(%arg0: i32, %arg1: memref<8x32xf32, #tpu.memory_space<vmem>>, %arg2: memref<8x16xf32, #tpu.memory_space<vmem>>, %arg3: memref<8x8xf32, #tpu.memory_space<vmem>>, %arg4: memref<8x3xi32, #tpu.memory_space<vmem>>, %arg5: memref<1x8x128xf32, #tpu.memory_space<vmem>>) attributes {dimension_semantics = [#tpu.dimension_semantics<parallel>], iteration_bounds = array<i64: 1>, scalar_prefetch = 0 : i64, scratch_operands = 0 : i64, tpu.core_type = #tpu.core_type<tc>, window_params = [{transform_indices = @transform_0, window_bounds = array<i64: 8, 32>}, {transform_indices = @transform_1, window_bounds = array<i64: 8, 16>}, {transform_indices = @transform_2, window_bounds = array<i64: 8, 8>}, {transform_indices = @transform_3, window_bounds = array<i64: 8, 3>}, {transform_indices = @transform_4, window_bounds = array<i64: 1, 8, 128>}]} {
    %c0 = arith.constant 0 : index
    %c0_0 = arith.constant 0 : index
    %0 = vector.load %arg4[%c0, %c0_0] : memref<8x3xi32, #tpu.memory_space<vmem>>, vector<8x3xi32>
    %c0_1 = arith.constant 0 : index
    %c0_2 = arith.constant 0 : index
    %1 = vector.load %arg1[%c0_1, %c0_2] : memref<8x32xf32, #tpu.memory_space<vmem>>, vector<8x32xf32>
    %2 = vector.extract_strided_slice %0 {offsets = [0, 0], sizes = [8, 1], strides = [1, 1]} : vector<8x3xi32> to vector<8x1xi32>
    %3 = tpu.iota {dimensions = array<i32: 1>} : vector<8x32xi32>
    %cst = arith.constant dense<0xFF800000> : vector<8xf32>
    %4 = vector.multi_reduction <maximumf>, %1, %cst [1] : vector<8x32xf32> to vector<8xf32>
    %5 = vector.shape_cast %4 : vector<8xf32> to vector<8x1xf32>
    %6 = vector.broadcast %5 : vector<8x1xf32> to vector<8x32xf32>
    %7 = arith.subf %1, %6 : vector<8x32xf32>
    %8 = math.exp %7 : vector<8x32xf32>
    %cst_3 = arith.constant dense<0.000000e+00> : vector<8xf32>
    %9 = vector.multi_reduction <add>, %8, %cst_3 [1] : vector<8x32xf32> to vector<8xf32>
    %10 = vector.shape_cast %9 : vector<8xf32> to vector<8x1xf32>
    %11 = math.log %10 : vector<8x1xf32>
    %12 = arith.addf %5, %11 : vector<8x1xf32>
    %13 = vector.broadcast %2 : vector<8x1xi32> to vector<8x32xi32>
    %14 = arith.cmpi eq, %3, %13 : vector<8x32xi32>
    %cst_4 = arith.constant 0.000000e+00 : f32
    %15 = vector.broadcast %cst_4 : f32 to vector<8x32xf32>
    %16 = arith.select %14, %1, %15 : vector<8x32xi1>, vector<8x32xf32>
    %cst_5 = arith.constant dense<0.000000e+00> : vector<8xf32>
    %17 = vector.multi_reduction <add>, %16, %cst_5 [1] : vector<8x32xf32> to vector<8xf32>
    %18 = vector.shape_cast %17 : vector<8xf32> to vector<8x1xf32>
    %19 = arith.subf %12, %18 : vector<8x1xf32>
    %c0_6 = arith.constant 0 : index
    %c0_7 = arith.constant 0 : index
    %20 = vector.load %arg2[%c0_6, %c0_7] : memref<8x16xf32, #tpu.memory_space<vmem>>, vector<8x16xf32>
    %21 = vector.extract_strided_slice %0 {offsets = [0, 1], sizes = [8, 1], strides = [1, 1]} : vector<8x3xi32> to vector<8x1xi32>
    %22 = tpu.iota {dimensions = array<i32: 1>} : vector<8x16xi32>
    %cst_8 = arith.constant dense<0xFF800000> : vector<8xf32>
    %23 = vector.multi_reduction <maximumf>, %20, %cst_8 [1] : vector<8x16xf32> to vector<8xf32>
    %24 = vector.shape_cast %23 : vector<8xf32> to vector<8x1xf32>
    %25 = vector.broadcast %24 : vector<8x1xf32> to vector<8x16xf32>
    %26 = arith.subf %20, %25 : vector<8x16xf32>
    %27 = math.exp %26 : vector<8x16xf32>
    %cst_9 = arith.constant dense<0.000000e+00> : vector<8xf32>
    %28 = vector.multi_reduction <add>, %27, %cst_9 [1] : vector<8x16xf32> to vector<8xf32>
    %29 = vector.shape_cast %28 : vector<8xf32> to vector<8x1xf32>
    %30 = math.log %29 : vector<8x1xf32>
    %31 = arith.addf %24, %30 : vector<8x1xf32>
    %32 = vector.broadcast %21 : vector<8x1xi32> to vector<8x16xi32>
    %33 = arith.cmpi eq, %22, %32 : vector<8x16xi32>
    %cst_10 = arith.constant 0.000000e+00 : f32
    %34 = vector.broadcast %cst_10 : f32 to vector<8x16xf32>
    %35 = arith.select %33, %20, %34 : vector<8x16xi1>, vector<8x16xf32>
    %cst_11 = arith.constant dense<0.000000e+00> : vector<8xf32>
    %36 = vector.multi_reduction <add>, %35, %cst_11 [1] : vector<8x16xf32> to vector<8xf32>
    %37 = vector.shape_cast %36 : vector<8xf32> to vector<8x1xf32>
    %38 = arith.subf %31, %37 : vector<8x1xf32>
    %c0_12 = arith.constant 0 : index
    %c0_13 = arith.constant 0 : index
    %39 = vector.load %arg3[%c0_12, %c0_13] : memref<8x8xf32, #tpu.memory_space<vmem>>, vector<8x8xf32>
    %40 = vector.extract_strided_slice %0 {offsets = [0, 2], sizes = [8, 1], strides = [1, 1]} : vector<8x3xi32> to vector<8x1xi32>
    %41 = tpu.iota {dimensions = array<i32: 1>} : vector<8x8xi32>
    %cst_14 = arith.constant dense<0xFF800000> : vector<8xf32>
    %42 = vector.multi_reduction <maximumf>, %39, %cst_14 [1] : vector<8x8xf32> to vector<8xf32>
    %43 = vector.shape_cast %42 : vector<8xf32> to vector<8x1xf32>
    %44 = vector.broadcast %43 : vector<8x1xf32> to vector<8x8xf32>
    %45 = arith.subf %39, %44 : vector<8x8xf32>
    %46 = math.exp %45 : vector<8x8xf32>
    %cst_15 = arith.constant dense<0.000000e+00> : vector<8xf32>
    %47 = vector.multi_reduction <add>, %46, %cst_15 [1] : vector<8x8xf32> to vector<8xf32>
    %48 = vector.shape_cast %47 : vector<8xf32> to vector<8x1xf32>
    %49 = math.log %48 : vector<8x1xf32>
    %50 = arith.addf %43, %49 : vector<8x1xf32>
    %51 = vector.broadcast %40 : vector<8x1xi32> to vector<8x8xi32>
    %52 = arith.cmpi eq, %41, %51 : vector<8x8xi32>
    %cst_16 = arith.constant 0.000000e+00 : f32
    %53 = vector.broadcast %cst_16 : f32 to vector<8x8xf32>
    %54 = arith.select %52, %39, %53 : vector<8x8xi1>, vector<8x8xf32>
    %cst_17 = arith.constant dense<0.000000e+00> : vector<8xf32>
    %55 = vector.multi_reduction <add>, %54, %cst_17 [1] : vector<8x8xf32> to vector<8xf32>
    %56 = vector.shape_cast %55 : vector<8xf32> to vector<8x1xf32>
    %57 = arith.subf %50, %56 : vector<8x1xf32>
    %cst_18 = arith.constant 2.000000e+00 : f32
    %58 = vector.broadcast %cst_18 : f32 to vector<8x1xf32>
    %59 = arith.mulf %58, %19 : vector<8x1xf32>
    %60 = arith.addf %59, %38 : vector<8x1xf32>
    %61 = arith.addf %60, %57 : vector<8x1xf32>
    %cst_19 = arith.constant dense<0.000000e+00> : vector<1xf32>
    %62 = vector.multi_reduction <add>, %61, %cst_19 [0] : vector<8x1xf32> to vector<1xf32>
    %63 = vector.shape_cast %62 : vector<1xf32> to vector<1x1xf32>
    %64 = vector.shape_cast %63 : vector<1x1xf32> to vector<1x1x1xf32>
    %65 = vector.shape_cast %64 : vector<1x1x1xf32> to vector<1x1x1xf32>
    %66 = vector.broadcast %65 : vector<1x1x1xf32> to vector<1x8x128xf32>
    %c0_20 = arith.constant 0 : index
    %c0_21 = arith.constant 0 : index
    %c0_22 = arith.constant 0 : index
    %67 = vector.load %arg5[%c0_20, %c0_21, %c0_22] : memref<1x8x128xf32, #tpu.memory_space<vmem>>, vector<1x8x128xf32>
    tpu.vector_store %arg5[%c0_20, %c0_21, %c0_22], %66 {strides = array<i32>} : memref<1x8x128xf32, #tpu.memory_space<vmem>>, vector<1x8x128xf32>,
    return
  }
  func.func @transform_0(%arg0: i32) -> (i32, i32) {
    %c0_i32 = arith.constant 0 : i32
    %c0_i32_0 = arith.constant 0 : i32
    return %arg0, %c0_i32 : i32, i32
  }
  func.func @transform_1(%arg0: i32) -> (i32, i32) {
    %c0_i32 = arith.constant 0 : i32
    %c0_i32_0 = arith.constant 0 : i32
    return %arg0, %c0_i32 : i32, i32
  }
  func.func @transform_2(%arg0: i32) -> (i32, i32) {
    %c0_i32 = arith.constant 0 : i32
    %c0_i32_0 = arith.constant 0 : i32
    return %arg0, %c0_i32 : i32, i32
  }
  func.func @transform_3(%arg0: i32) -> (i32, i32) {
    %c0_i32 = arith.constant 0 : i32
    %c0_i32_0 = arith.constant 0 : i32
    return %arg0, %c0_i32 : i32, i32
  }
  func.func @transform_4(%arg0: i32) -> (i32, i32, i32) {
    %c0_i32 = arith.constant 0 : i32
    %c0_i32_0 = arith.constant 0 : i32
    %c0_i32_1 = arith.constant 0 : i32
    return %arg0, %c0_i32, %c0_i32_0 : i32, i32, i32
  }
}

</mosaic_0001>

<bundles_post_ra>
// kernel: tpu_custom_call.1
= control target key start
LH: loop header
LB: loop body
LE: loop exit
PB: predicated region body
PF: predicated region fallthrough
CT: control target
= control target key end

     0   :  { %9 = vsyncpa [#allocation3], 0  ;;  %s283_s0 = inlined_call_operand.vmem [shape: f32[8,32], index: 0, kind: input, shape index: {}]   ;;  %s284_s1 = inlined_call_operand.hbm [shape: f32[8,16], index: 1, kind: input, shape index: {}]   ;;  %s285_s2 = inlined_call_operand.hbm [shape: f32[8,8], index: 2, kind: input, shape index: {}]   ;;  %s286_s3 = inlined_call_operand.vmem [shape: s32[8,3], index: 3, kind: input, shape index: {}]   ;;  %s287_s4 = inlined_call_operand.hbm [shape: f32[1,8,128], index: 4, kind: output, shape index: {}]  }
   0x1   :  { %10 = vsyncpa [#allocation6], 0 }
   0x2   :  { %11 = vsyncpa [#allocation4], 0  ;;  %s228_s15 = smov [#allocation2]   ;;  %s229_s17 = smov [#allocation5]  }
   0x3   :  { %s20_s16 = sshll.u32 %s228_s15, 4  ;;  %s30_s18 = sshll.u32 %s229_s17, 4  ;;  %s21_s16 = int_to_ptr.vmem [resolvable:$true] %s20_s16  ;;  %s31_s18 = int_to_ptr.vmem [resolvable:$true] %s30_s18 }
   0x4   :  { %s170_s19 = scalar_lea.vmem %s21_s16, 128  ;;  %p175_p1 = scmp.lt.s32.totalorder %s21_s16, %s21_s16 }
   0x5   :  { %p171_p0 = scmp.ne.s32.totalorder %s21_s16, %s170_s19  ;;  %p176_p2 = scmp.lt.s32.totalorder %s170_s19, %s170_s19 }
   0x7   :  { %p177_p3 = por %p176_p2, %p175_p1 }
   0x9   :  { %p178_p4 = pnand %p177_p3, %p171_p0 }
   0xb   :  { %181 = shalt.err (!%p178_p4)
}
   0xc   :  { %23 = dma.hbm_to_vmem [thread:$0]  %s284_s1, 128, %s21_s16, [#allocation3]  }
   0xd   :  { %s190_s22 = scalar_lea.vmem %s31_s18, 128  ;;  %p195_p6 = scmp.lt.s32.totalorder %s31_s18, %s31_s18 }
   0xe   :  { %p191_p5 = scmp.ne.s32.totalorder %s31_s18, %s190_s22  ;;  %p196_p7 = scmp.lt.s32.totalorder %s190_s22, %s190_s22 }
  0x10   :  { %p197_p8 = por %p196_p7, %p195_p6 }
  0x12   :  { %p198_p9 = pnand %p197_p8, %p191_p5 }
  0x14   :  { %201 = shalt.err (!%p198_p9)
}
  0x15   :  { %33 = dma.hbm_to_vmem [thread:$0]  %s285_s2, 128, %s31_s18, [#allocation6]  }
  0x16   :  { %222 = dma.done.wait [#allocation3], 128  }
  0x17   :  { %223 = vsyncadd [#allocation3], 4294967168 }
  0x18   :  { %224 = dma.done.wait [#allocation6], 128  }
  0x19   :  { %225 = vsyncadd [#allocation6], 4294967168  ;;  %v230_v0 = vmov 0   ;;  %v231_v1 = vmov 1   ;;  %vm46_vm0 = vcmask 261120   ;;  %vm92_vm1 = vcmask 64512  }
  0x1a   :  { %146 = vset.pattern.permute.xlu1 %v230_v0  ;;  %147 = vset.pattern.permute.xlu0 %v231_v1  ;;  %v43_v2 = vld [vmem:[%s283_s0] sm:$0xff]  ;;  %v91_v3 = vld [vmem:[#allocation5] sm:$0xff]  ;;  %vm69_vm2 = vcmask 130048   ;;  %v232_v9 = vmov 2   ;;  %v44_v19 = vlaneseq  ;;  %s233_s0 = smov [#allocation7]  }
  0x1b   :  { %v68_v4 = vld [vmem:[#allocation2] sm:$0xff]  ;;  %v47_v5 = vsel %vm46_vm0, %v43_v2, -inf  ;;  %v93_v6 = vsel %vm92_vm1, %v91_v3, -inf }
  0x1c   :  { %48 = vmax.xlane.f32.xlu0 %v47_v5  ;;  %94 = vmax.xlane.f32.xlu1 %v93_v6  ;;  %v70_v7 = vsel %vm69_vm2, %v68_v4, -inf  ;;  %v42_v8 = vld [vmem:[%s286_s3] sm:$0xff]  ;;  %v45_v20 = vand.u32 127, %v44_v19  ;;  %s130_s3 = sshll.u32 %s233_s0, 4  ;;  %s131_s3 = int_to_ptr.vmem [resolvable:$true] %s130_s3 }
  0x1d   :  { %s202_s27 = scalar_lea.vmem %s131_s3, 128  ;;  %p207_p11 = scmp.lt.s32.totalorder %s131_s3, %s131_s3 }
  0x1e   :  { %p203_p10 = scmp.ne.s32.totalorder %s131_s3, %s202_s27  ;;  %p208_p12 = scmp.lt.s32.totalorder %s202_s27, %s202_s27 }
  0x20   :  { %71 = vmax.xlane.f32.xlu0 %v70_v7  ;;  %p209_p13 = por %p208_p12, %p207_p11 }
  0x22   :  { %p210_p0 = pnand %p209_p13, %p203_p10 }
  0x2d   :  { %60 = vperm.xlu1 %146, %v42_v8  }
  0x31   :  { %148 = vset.pattern.permute.xlu1 %v232_v9 }
  0x32   :  { %106 = vperm.xlu1 %148, %v42_v8  }
  0x36   :  { %83 = vperm.xlu0 %147, %v42_v8  }
  0x3a   :  { %149 = vset.pattern.permute.xlu0 %v232_v9 }
  0xa5   :  { %v49_v10 = vpop.xlane.xlu0 %48  ;;  %v95_v11 = vpop.xlane.xlu1 %94 }
  0xa6   :  { %v50_v12 = vsub.f32 %v43_v2, %v49_v10  ;;  %v96_v13 = vsub.f32 %v91_v3, %v95_v11 }
  0xa8   :  { %v51_v14 = vmul.f32 1.442695, %v50_v12  ;;  %v97_v15 = vmul.f32 1.442695, %v96_v13 }
  0xa9   :  { %v72_v16 = vpop.xlane.xlu0 %71  ;;  %v61_v21 = vpop.permute.xlu1 %60 }
  0xaa   :  { %150 = vpow2.f32 %v51_v14  ;;  %v73_v17 = vsub.f32 %v68_v4, %v72_v16  ;;  %vm62_vm3 = vcmp.eq.s32.totalorder %v45_v20, %v61_v21 }
  0xab   :  { %152 = vpow2.f32 %v97_v15  ;;  %v63_v28 = vsel %vm62_vm3, %v43_v2, 0.0 }
  0xac   :  { %v74_v18 = vmul.f32 1.442695, %v73_v17  ;;  %v64_v31 = vsel %vm46_vm0, %v63_v28, 0.0 }
  0xad   :  { %v107_v30 = vpop.permute.xlu1 %106 }
  0xae   :  { %154 = vpow2.f32 %v74_v18  ;;  %vm108_vm5 = vcmp.eq.s32.totalorder %v45_v20, %v107_v30 }
  0xaf   :  { %v109_v34 = vsel %vm108_vm5, %v91_v3, 0.0 }
  0xb0   :  { %v110_v35 = vsel %vm92_vm1, %v109_v34, 0.0 }
  0xb1   :  { %v84_v25 = vpop.permute.xlu0 %83 }
  0xb2   :  { %vm85_vm4 = vcmp.eq.s32.totalorder %v45_v20, %v84_v25 }
  0xb3   :  { %v86_v32 = vsel %vm85_vm4, %v68_v4, 0.0 }
  0xb4   :  { %v87_v33 = vsel %vm69_vm2, %v86_v32, 0.0 }
  0xb7   :  { %v151_v22 = vpop.eup %150 }
  0xb8   :  { %v153_v23 = vpop.eup %152  ;;  %v53_v24 = vsel %vm46_vm0, %v151_v22, 0.0 }
  0xb9   :  { %54 = vadd.xlane.f32.xlu1 %v53_v24  ;;  %v99_v26 = vsel %vm92_vm1, %v153_v23, 0.0 }
  0xbb   :  { %v155_v27 = vpop.eup %154 }
  0xbc   :  { %v76_v29 = vsel %vm69_vm2, %v155_v27, 0.0 }
  0xbd   :  { %77 = vadd.xlane.f32.xlu0 %v76_v29  ;;  %100 = vadd.xlane.f32.xlu1 %v99_v26 }
  0xc1   :  { %65 = vadd.xlane.f32.xlu1 %v64_v31 }
  0xc5   :  { %88 = vadd.xlane.f32.xlu1 %v87_v33 }
  0xc9   :  { %111 = vadd.xlane.f32.xlu1 %v110_v35 }
 0x142   :  { %v55_v36 = vpop.xlane.xlu1 %54 }
 0x143   :  { %156 = vlog2.f32 %v55_v36 }
 0x146   :  { %v78_v37 = vpop.xlane.xlu0 %77  ;;  %v101_v38 = vpop.xlane.xlu1 %100 }
 0x147   :  { %158 = vlog2.f32 %v78_v37 }
 0x148   :  { %160 = vlog2.f32 %v101_v38 }
 0x14a   :  { %v66_v39 = vpop.xlane.xlu1 %65 }
 0x14e   :  { %v89_v42 = vpop.xlane.xlu1 %88 }
 0x150   :  { %v157_v40 = vpop.eup %156 }
 0x151   :  { %v57_v41 = vmul.f32 0.6931472, %v157_v40 }
 0x152   :  { %v112_v51 = vpop.xlane.xlu1 %111 }
 0x153   :  { %v58_v43 = vadd.f32 %v57_v41, %v49_v10 }
 0x154   :  { %v159_v44 = vpop.eup %158 }
 0x155   :  { %v161_v45 = vpop.eup %160  ;;  %v80_v46 = vmul.f32 0.6931472, %v159_v44  ;;  %v67_v47 = vsub.f32 %v58_v43, %v66_v39 }
 0x156   :  { %v103_v48 = vmul.f32 0.6931472, %v161_v45 }
 0x157   :  { %v81_v49 = vadd.f32 %v80_v46, %v72_v16  ;;  %v114_v52 = vmul.f32 2.0, %v67_v47 }
 0x158   :  { %v104_v50 = vadd.f32 %v103_v48, %v95_v11 }
 0x159   :  { %v90_v53 = vsub.f32 %v81_v49, %v89_v42 }
 0x15a   :  { %v113_v55 = vsub.f32 %v104_v50, %v112_v51 }
 0x15b   :  { %v115_v54 = vadd.f32 %v114_v52, %v90_v53 }
 0x15d   :  { %v116_v56 = vadd.f32 %v115_v54, %v113_v55 }
 0x15f   :  { %v117_v57 = vrot.slane %v116_v56, 4 }
 0x161   :  { %v118_v58 = vadd.f32 %v117_v57, %v116_v56 }
 0x163   :  { %v119_v59 = vrot.slane %v118_v58, 2 }
 0x165   :  { %v120_v60 = vadd.f32 %v119_v59, %v118_v58 }
 0x167   :  { %v121_v61 = vrot.slane %v120_v60, 1 }
 0x169   :  { %v122_v62 = vadd.f32 %v121_v61, %v120_v60 }
 0x16b   :  { %123 = vst [vmem:[#allocation7] sm:$0xff] %v122_v62 }
 0x16c   :  { %213 = shalt.err (!%p210_p0)
}
 0x16d   :  { %133 = dma.vmem_to_hbm [thread:$0]  %s131_s3, 128, %s287_s4, [#allocation4]  }
 0x16e   :  { %226 = dma.done.wait [#allocation4], 128  }
 0x16f   :  { %227 = vsyncadd [#allocation4], 4294967168 }
 0x170   :  { %137 = vsyncpa [#allocation3], 1 }
 0x171   :  { %138 = vsyncpa [#allocation6], 1 }
 0x172   :  { %139 = vsyncpa [#allocation4], 1 }

</bundles_post_ra>
